<compile_context>
chip_gen: v7x
topology: tpu7x:2x2x1
jax: 0.10.0
libtpu: 0.0.40
codegen_flags: <defaults>
</compile_context>

<pallas_src>
import jax
import jax.numpy as jnp
from jax.experimental import pallas as pl
from jax.experimental.pallas import tpu as pltpu

_LANES = 128
_MIB = 1024 * 1024


def _round_up(a: int, b: int) -> int:
    return (a + b - 1) // b * b


def _vmem_capacity_bytes() -> int:
    """Physical VMEM per TensorCore; conservative 64 MiB fallback (v7x)."""
    try:
        info = pltpu.get_tpu_info()
        cap = int(getattr(info, "vmem_capacity_bytes", 0) or 0)
        if cap > 0:
            return cap
    except Exception:
        pass
    return 64 * _MIB


def _shuffle_copy_kernel(x_ref, o_ref):
    """x_ref: (bn, g, cblk, *spatial)   o_ref: (bn, cblk, g, *spatial).

    Pure VMEM slab copies that permute the two outer channel axes via static
    addressing (no XLU / no arithmetic). Iterate over whichever channel axis
    gives the fewer / denser copies; in the lane-aligned 5-D layout both
    directions are fully dense, in the ragged 4-D layout the cblk-loop gives
    lane-dense stores (reads have 3 vld slots of headroom).
    """
    g = x_ref.shape[1]
    c = x_ref.shape[2]
    if c <= g or c <= 16:
        for i in range(c):
            o_ref[:, i] = x_ref[:, :, i]
    else:
        for j in range(g):
            o_ref[:, :, j] = x_ref[:, j]


def shuffle_block(x: jax.Array, groups: int) -> jax.Array:
    """Channel shuffle: [N,C,H,W] -> view(N,g,C/g,H,W) -> permute(0,2,1,3,4) -> [N,C,H,W]."""
    N, C, H, W = x.shape
    g = int(groups)
    if C % g != 0:
        raise ValueError("channels must be divisible by groups")
    cg = C // g
    if g == 1 or cg == 1:
        return x  # shuffle is the identity

    HW = H * W
    itemsize = jnp.dtype(x.dtype).itemsize
    sub = max(8, 32 // itemsize)  # sublane multiple: 8 f32 / 16 bf16 / 32 int8
    cap = _vmem_capacity_bytes()
    # ~8 MiB blocks on 128 MiB VMEM parts (v5e/v6e), ~4 MiB on v7x (64 MiB).
    target = min(12 * _MIB, max(4 * _MIB, cap // 16))

    slab_bytes = C * HW * itemsize  # one batch element, real HBM bytes
    lane_aligned = (HW % _LANES == 0)

    if lane_aligned:
        # Fast path: (N, g, cg, S, 128); channel axes are pure outer dims.
        S = HW // _LANES
        if slab_bytes <= target:
            bn = min(N, max(1, target // slab_bytes))
            tcg, ts = cg, S
        else:
            bn = 1
            row_bytes = C * _LANES * itemsize          # one sublane row, all channels
            ts = (target // row_bytes) // sub * sub    # spatial (sublane) tile
            if ts >= sub:
                ts, tcg = min(ts, S), cg
            else:
                # Very wide channel dim: split cg too (outer axis, no layout constraint).
                ts = S if S <= sub else sub
                per_c_bytes = g * ts * _LANES * itemsize
                tcg = min(cg, max(1, target // per_c_bytes))
        grid_c, grid_s = pl.cdiv(cg, tcg), pl.cdiv(S, ts)
    else:
        # Ragged spatial extent: keep the full trailing (channel, HW) dims in each
        # block (full-extent dims are always layout-legal) -> no HBM padding and no
        # extra pad/slice passes; padding exists only inside the VMEM tile.
        S, ts = 1, 1
        if slab_bytes <= target:
            bn = min(N, max(1, target // slab_bytes))
            tcg = cg
        else:
            bn = 1
            per_c_bytes = g * HW * itemsize
            tcg = (target // per_c_bytes) // sub * sub
            tcg = min(cg, max(sub, tcg))  # multiple of `sub`, or full cg
        grid_c, grid_s = pl.cdiv(cg, tcg), 1

    grid_n = pl.cdiv(N, bn)

    # v7x has 2 TensorCores; an all-"parallel" grid needs >= 2 cells to use both.
    if grid_n * grid_c * grid_s == 1:
        if N > 1:
            bn = pl.cdiv(N, 2)
            grid_n = pl.cdiv(N, bn)
        elif N * slab_bytes >= _MIB:
            if lane_aligned and ts >= 2 * sub:
                ts = _round_up(pl.cdiv(ts, 2), sub)
                grid_s = pl.cdiv(S, ts)
            elif (not lane_aligned) and tcg >= 2 * sub:
                tcg = _round_up(pl.cdiv(tcg, 2), sub)
                grid_c = pl.cdiv(cg, tcg)
            elif lane_aligned and tcg >= 2:
                tcg = pl.cdiv(tcg, 2)
                grid_c = pl.cdiv(cg, tcg)

    if lane_aligned:
        x_in = x.reshape(N, g, cg, S, _LANES)  # free view
        in_spec = pl.BlockSpec((bn, g, tcg, ts, _LANES),
                               lambda n, c, s: (n, 0, c, s, 0))
        out_spec = pl.BlockSpec((bn, tcg, g, ts, _LANES),
                                lambda n, c, s: (n, c, 0, s, 0))
        out_shape = jax.ShapeDtypeStruct((N, cg, g, S, _LANES), x.dtype)
        in_blk = bn * g * tcg * _round_up(ts, sub) * _LANES * itemsize
        out_blk = in_blk
    else:
        x_in = x.reshape(N, g, cg, HW)  # free view
        in_spec = pl.BlockSpec((bn, g, tcg, HW),
                               lambda n, c, s: (n, 0, c, 0))
        out_spec = pl.BlockSpec((bn, tcg, g, HW),
                                lambda n, c, s: (n, c, 0, 0))
        out_shape = jax.ShapeDtypeStruct((N, cg, g, HW), x.dtype)
        hw_pad = _round_up(HW, _LANES)
        in_blk = bn * g * _round_up(tcg, sub) * hw_pad * itemsize
        out_blk = bn * tcg * _round_up(g, sub) * hw_pad * itemsize

    # Double-buffered input + output blocks plus headroom; clamp to physical VMEM.
    vmem_needed = 2 * (in_blk + out_blk)
    vmem_limit = min(max(32 * _MIB, vmem_needed + 8 * _MIB), int(cap * 0.9))

    out = pl.pallas_call(
        _shuffle_copy_kernel,
        out_shape=out_shape,
        grid=(grid_n, grid_c, grid_s),
        in_specs=[in_spec],
        out_specs=out_spec,
        compiler_params=pltpu.CompilerParams(
            dimension_semantics=("parallel", "parallel", "parallel"),
            vmem_limit_bytes=vmem_limit,
        ),
        cost_estimate=pl.CostEstimate(
            flops=0,
            transcendentals=0,
            bytes_accessed=2 * N * C * HW * itemsize,  # real (unpadded) traffic
        ),
    )(x_in)

    # (N, cg, g, ...) is contiguous as (N, C, H, W): pure views, no extra passes.
    return out.reshape(N, C, H, W)


def shuffle_block_ref(x: jax.Array, groups: int) -> jax.Array:
    """Pure-JAX reference matching the PyTorch forward exactly."""
    N, C, H, W = x.shape
    g = groups
    return (
        x.reshape(N, g, C // g, H, W)
        .transpose(0, 2, 1, 3, 4)
        .reshape(N, C, H, W)
    )


if __name__ == "__main__":
    key = jax.random.PRNGKey(0)

    # Case 1: lane-aligned spatial extent (H*W = 256 = 2*128), fast 5-D path.
    x1 = jax.random.normal(key, (2, 4, 16, 16), dtype=jnp.float32)
    out1 = jax.block_until_ready(shuffle_block(x1, 2))
    ref1 = shuffle_block_ref(x1, 2)
    assert out1.shape == ref1.shape and out1.dtype == ref1.dtype
    assert jnp.array_equal(out1, ref1), "mismatch (lane-aligned path)"

    # Case 2: ragged spatial extent (7*7 = 49) handled in-kernel, no HBM padding.
    x2 = jax.random.normal(jax.random.PRNGKey(0), (2, 6, 7, 7), dtype=jnp.float32)
    out2 = jax.block_until_ready(shuffle_block(x2, 3))
    ref2 = shuffle_block_ref(x2, 3)
    assert jnp.array_equal(out2, ref2), "mismatch (ragged path)"

    # Case 3: ragged + bf16 + batch-1 (dtype-aware sublane sizing, N=1 grid).
    x3 = jax.random.normal(jax.random.PRNGKey(0), (1, 8, 14, 14), dtype=jnp.bfloat16)
    out3 = jax.block_until_ready(shuffle_block(x3, 4))
    ref3 = shuffle_block_ref(x3, 4)
    assert jnp.array_equal(out3, ref3), "mismatch (bf16 ragged path)"

    print("KERNEL_OK")
</pallas_src>

<mosaic_0001>
module attributes {stable_mosaic.version = 11 : i64} {
  func.func @_shuffle_copy_kernel(%arg0: i32, %arg1: i32, %arg2: i32, %arg3: memref<1x2x2x2x128xf32, #tpu.memory_space<vmem>>, %arg4: memref<1x2x2x2x128xf32, #tpu.memory_space<vmem>>) attributes {dimension_semantics = [#tpu.dimension_semantics<parallel>, #tpu.dimension_semantics<parallel>, #tpu.dimension_semantics<parallel>], iteration_bounds = array<i64: 2, 1, 1>, scalar_prefetch = 0 : i64, scratch_operands = 0 : i64, tpu.core_type = #tpu.core_type<tc>, window_params = [{transform_indices = @transform_0, window_bounds = array<i64: 1, 2, 2, 2, 128>}, {transform_indices = @transform_1, window_bounds = array<i64: 1, 2, 2, 2, 128>}]} {
    %c0 = arith.constant 0 : index
    %c0_0 = arith.constant 0 : index
    %c0_1 = arith.constant 0 : index
    %c0_2 = arith.constant 0 : index
    %c0_3 = arith.constant 0 : index
    %0 = vector.load %arg3[%c0, %c0_0, %c0_1, %c0_2, %c0_3] : memref<1x2x2x2x128xf32, #tpu.memory_space<vmem>>, vector<1x2x1x2x128xf32>
    %1 = vector.shape_cast %0 : vector<1x2x1x2x128xf32> to vector<1x2x2x128xf32>
    %c0_4 = arith.constant 0 : index
    %c0_5 = arith.constant 0 : index
    %c0_6 = arith.constant 0 : index
    %c0_7 = arith.constant 0 : index
    %c0_8 = arith.constant 0 : index
    %2 = vector.load %arg4[%c0_4, %c0_5, %c0_6, %c0_7, %c0_8] : memref<1x2x2x2x128xf32, #tpu.memory_space<vmem>>, vector<1x1x2x2x128xf32>
    %3 = vector.shape_cast %2 : vector<1x1x2x2x128xf32> to vector<1x2x2x128xf32>
    %4 = vector.shape_cast %1 : vector<1x2x2x128xf32> to vector<1x1x2x2x128xf32>
    tpu.vector_store %arg4[%c0_4, %c0_5, %c0_6, %c0_7, %c0_8], %4 {strides = array<i32>} : memref<1x2x2x2x128xf32, #tpu.memory_space<vmem>>, vector<1x1x2x2x128xf32>,
    %c0_9 = arith.constant 0 : index
    %c0_10 = arith.constant 0 : index
    %c1 = arith.constant 1 : index
    %c0_11 = arith.constant 0 : index
    %c0_12 = arith.constant 0 : index
    %5 = vector.load %arg3[%c0_9, %c0_10, %c1, %c0_11, %c0_12] : memref<1x2x2x2x128xf32, #tpu.memory_space<vmem>>, vector<1x2x1x2x128xf32>
    %6 = vector.shape_cast %5 : vector<1x2x1x2x128xf32> to vector<1x2x2x128xf32>
    %c0_13 = arith.constant 0 : index
    %c1_14 = arith.constant 1 : index
    %c0_15 = arith.constant 0 : index
    %c0_16 = arith.constant 0 : index
    %c0_17 = arith.constant 0 : index
    %7 = vector.load %arg4[%c0_13, %c1_14, %c0_15, %c0_16, %c0_17] : memref<1x2x2x2x128xf32, #tpu.memory_space<vmem>>, vector<1x1x2x2x128xf32>
    %8 = vector.shape_cast %7 : vector<1x1x2x2x128xf32> to vector<1x2x2x128xf32>
    %9 = vector.shape_cast %6 : vector<1x2x2x128xf32> to vector<1x1x2x2x128xf32>
    tpu.vector_store %arg4[%c0_13, %c1_14, %c0_15, %c0_16, %c0_17], %9 {strides = array<i32>} : memref<1x2x2x2x128xf32, #tpu.memory_space<vmem>>, vector<1x1x2x2x128xf32>,
    return
  }
  func.func @transform_0(%arg0: i32, %arg1: i32, %arg2: i32) -> (i32, i32, i32, i32, i32) {
    %c0_i32 = arith.constant 0 : i32
    %c0_i32_0 = arith.constant 0 : i32
    %c0_i32_1 = arith.constant 0 : i32
    return %arg0, %c0_i32, %arg1, %arg2, %c0_i32_0 : i32, i32, i32, i32, i32
  }
  func.func @transform_1(%arg0: i32, %arg1: i32, %arg2: i32) -> (i32, i32, i32, i32, i32) {
    %c0_i32 = arith.constant 0 : i32
    %c0_i32_0 = arith.constant 0 : i32
    %c0_i32_1 = arith.constant 0 : i32
    return %arg0, %arg1, %c0_i32, %arg2, %c0_i32_0 : i32, i32, i32, i32, i32
  }
}

</mosaic_0001>

<bundles_post_ra>
// kernel: tpu_custom_call.1
= control target key start
LH: loop header
LB: loop body
LE: loop exit
PB: predicated region body
PF: predicated region fallthrough
CT: control target
= control target key end

     0   :  { %6 = vsyncpa [#allocation3], 0  ;;  %s679_s0 = inlined_call_operand.hbm [shape: f32[2,2,2,2,128], index: 0, kind: input, shape index: {}]   ;;  %s680_s1 = inlined_call_operand.hbm [shape: f32[2,2,2,2,128], index: 1, kind: output, shape index: {}]  }
   0x1   :  { %8 = vsyncpa [#allocation3 + $0x1], 0 }
   0x2   :  { %9 = vsyncpa [#allocation4], 0 }
   0x3   :  { %11 = vsyncpa [#allocation4 + $0x1], 0  ;;  %s504_s6 = smov 0   ;;  %s506_s7 = smov 0  }
   0x4   :  { %s508_s8 = smov 0   ;;  %s510_s9 = smov 0  }
   0x5   :  { %s512_s10 = smov 0   ;;  %s514_s11 = smov 0  }
   0x6 LB: > { %s287_s12 = sadd.s32 4294967295, %s486_s11   ;;  %s288_s13 = sadd.s32 4294967294, %s486_s11   ;;  %s486_s11 = sphi %s514_s11, %s17_s11   ;;  %s482_s10 = sphi %s512_s10, %s695_s10   ;;  %s478_s9 = sphi %s510_s9, %s694_s9   ;;  %s474_s8 = sphi %s508_s8, %s693_s8   ;;  %s470_s7 = sphi %s506_s7, %s692_s7   ;;  %s466_s6 = sphi %s504_s6, %s691_s6  }
   0x7   : > { %s36_s14 = sadd.s32 1, %s482_s10  ;;  %s47_s15 = sadd.s32 1, %s474_s8 }
   0x8   : > { %p38_p0 = scmp.ge.s32.totalorder %s36_s14, 2  ;;  %p54_p1 = scmp.ne.s32.totalorder %s474_s8, %s470_s7 }
   0x9   : > { %p55_p2 = scmp.eq.s32.totalorder %s486_s11, 0  ;;  %p60_p3 = scmp.ne.s32.totalorder %s470_s7, %s466_s6 }
   0xa   : > { %s697_s14 = smov (%p38_p0, %s36_s14), 0  ;;  %p61_p5 = scmp.eq.s32.totalorder %s287_s12, 0 }
   0xb   : > { %p545_p4 = por %p55_p2, %p54_p1  ;;  %s40_s17 = ssub.s32 %s482_s10, %s697_s14 }
   0xc   : > { %p88_p6 = scmp.eq.s32.totalorder %s287_s12, 1  ;;  %p45_p7 = scmp.eq.s32.totalorder %s40_s17, 0 }
   0xd   : > { %p551_p8 = por %p61_p5, %p60_p3  ;;  %p94_p10 = scmp.eq.s32.totalorder %s288_s13, 1 }
   0xe   : > { %p555_p9 = por %p88_p6, %p54_p1  ;;  %p320_p13 = scmp.lt.s32.totalorder %s486_s11, 2 }
   0xf   : > { %s560_s20 = scalar_select %p45_p7, %s474_s8, %s47_s15  }
  0x10   : > { %s684_s19 = scalar_select %p555_p9, 1, 0 }
  0x11   : > { %p562_p11 = por %p94_p10, %p60_p3  ;;  %s114_s22 = sand.u32 1, %s474_s8  }
  0x12   : > { %s291_s23 = sshll.u32 %s114_s22, 3  ;;  %s306_s24 = sshll.u32 %s482_s10, 7 }
  0x13   : > { %s685_s21 = scalar_select %p562_p11, 1, 0 }
  0x14   : > { %s573_s27 = scalar_lea.hbm %s679_s0, %s306_s24  ;;  %s118_s28 = scalar_lea.vmem [#allocation2], %s291_s23 }
  0x15   : > { %s128_s29 = sshll.u32 %s118_s28, 4  ;;  %p579_p0 = pnand %p320_p13, %p545_p4  ;;  %s575_s29 = int_to_ptr.vmem [resolvable:$true] %s128_s29 }
  0x16   : > { %s584_s2 = scalar_lea.sflag [#allocation3], %s114_s22  ;;  %s374_s3 = scalar_lea.hbm %s573_s27, 128 }
  0x17   : > { %p375_p2 = scmp.ne.s32.totalorder %s573_s27, %s374_s3  ;;  %p376_p3 = pneg %p579_p0 }
  0x18   : > { %s379_s12 = scalar_lea.hbm %s679_s0, 256  ;;  %p380_p4 = scmp.lt.u32.totalorder %s573_s27, %s679_s0 }
  0x19   : > { %p377_p5 = pnand %p376_p3, %p375_p2  ;;  %p381_p7 = scmp.lt.u32.totalorder %s379_s12, %s374_s3 }
  0x1a   : > { %p383_p13 = scmp.lt.u32.totalorder %s374_s3, %s573_s27 }
  0x1b   : > { %p378_p6 = pneg %p377_p5  ;;  %p382_p10 = por %p381_p7, %p380_p4 }
  0x1d   : > { %p384_p12 = por %p383_p13, %p382_p10 }
  0x1f   : > { %p385_p1 = pnand %p384_p12, %p378_p6 }
  0x21   : > { %388 = shalt.err (!%p385_p1)
}
  0x22   : > { %s389_s16 = scalar_lea.vmem %s575_s29, 128  ;;  %s488_s17 = smov [#allocation2]  }
  0x23   : > { %p390_p2 = scmp.ne.s32.totalorder %s575_s29, %s389_s16  ;;  %s394_s22 = sshll.u32 %s488_s17, 4  ;;  %s395_s22 = int_to_ptr.vmem [resolvable:$false] %s394_s22 }
  0x24   : > { %s396_s23 = scalar_lea.vmem %s395_s22, 256  ;;  %p397_p9 = scmp.lt.s32.totalorder %s575_s29, %s395_s22 }
  0x25   : > { %p392_p5 = pnand %p390_p2, %p376_p3  ;;  %p398_p4 = scmp.lt.s32.totalorder %s396_s23, %s389_s16 }
  0x27   : > { %p393_p11 = pneg %p392_p5  ;;  %p399_p7 = por %p398_p4, %p397_p9 }
  0x29   : > { %p400_p10 = pnand %p399_p7, %p393_p11 }
  0x2b   : > { %403 = shalt.err (!%p400_p10)
}
  0x2c   : > { %s489_s24 = smov 32   ;;  %s490_s25 = smov 2  }
  0x2d   : > { %315 = dma.hbm_to_vmem [thread:$0]  (!%p579_p0), %s573_s27, 128, %s575_s29, %s584_s2, %s489_s24, %s489_s24, %s490_s25  }
  0x2e   : > { %p136_p12 = scmp.lt.s32.totalorder %s486_s11, 3  ;;  %p687_p1 = scmp.ge.s32.totalorder %s486_s11, 1 }
  0x30   : > { %p137_p3 = pnand %p687_p1, %p136_p12 }
  0x31   : > { %s616_s26 = sand.u32 (!%p137_p3), 1, %s470_s7  }
  0x32   : > { %140 = sbr.rel (%p137_p3) target bundleno = 86 (0x56), region = 24  ;;  %s295_s28 = sshll.u32 (!%p137_p3), %s616_s26, 3 }
  0x33   : > { %s143_s3 = scalar_lea.sflag (!%p137_p3), [#allocation3], %s616_s26  ;;  %s146_s4 = scalar_lea.vmem (!%p137_p3), [#allocation2], %s295_s28 }
  0x39   : > { %457 = dma.done.wait (%p551_p8), %s143_s3, 128  }
  0x3a   : > { %459 = vsyncadd (%p551_p8), %s143_s3, 4294967168  ;;  %s164_s27 = scalar_lea.vmem [#allocation5], %s295_s28  ;;  %s307_s30 = sshll.u32 %s478_s9, 7  ;;  %v167_v0 = vld [vmem:[%s146_s4] sm:$0x3] }
  0x3b   : > { %s195_s29 = sshll.u32 %s164_s27, 4  ;;  %v168_v1 = vld [vmem:[%s146_s4 + $0x4] sm:$0x3]  ;;  %v297_v2 = vld [vmem:[%s146_s4 + $0x2] sm:$0x3]  ;;  %s630_s12 = scalar_lea.hbm %s680_s1, %s307_s30  ;;  %169 = vst [vmem:[%s164_s27] sm:$0x3] %v167_v0  ;;  %s625_s29 = int_to_ptr.vmem [resolvable:$true] %s195_s29 }
  0x3c   : > { %170 = vst [vmem:[%s164_s27 + $0x2] sm:$0x3] %v168_v1  ;;  %299 = vst [vmem:[%s164_s27 + $0x4] sm:$0x3] %v297_v2  ;;  %v298_v3 = vld [vmem:[%s146_s4 + $0x6] sm:$0x3] }
  0x3d   : > { %300 = vst [vmem:[%s164_s27 + $0x6] sm:$0x3] %v298_v3  ;;  %s178_s18 = scalar_lea.sflag [#allocation4], %s616_s26  ;;  %s404_s9 = scalar_lea.vmem %s625_s29, 128 }
  0x3e   : > { %p405_p8 = scmp.ne.s32.totalorder %s625_s29, %s404_s9  ;;  %p688_p9 = scmp.ne.s32.totalorder %s684_s19, 0 }
  0x3f   : > { %s491_s13 = smov [#allocation5]  }
  0x40   : > { %p406_p11 = pnand %p405_p8, %p688_p9  ;;  %s408_s15 = sshll.u32 %s491_s13, 4  ;;  %s409_s15 = int_to_ptr.vmem [resolvable:$false] %s408_s15 }
  0x41   : > { %s410_s16 = scalar_lea.vmem %s409_s15, 256  ;;  %p411_p6 = scmp.lt.s32.totalorder %s625_s29, %s409_s15 }
  0x42   : > { %p407_p0 = pneg %p406_p11  ;;  %p412_p13 = scmp.lt.s32.totalorder %s410_s16, %s404_s9 }
  0x44   : > { %p413_p2 = por %p412_p13, %p411_p6 }
  0x46   : > { %p414_p5 = pnand %p413_p2, %p407_p0 }
  0x48   : > { %417 = shalt.err (!%p414_p5)
}
  0x49   : > { %s418_s17 = scalar_lea.hbm %s630_s12, 128  ;;  %s422_s24 = scalar_lea.hbm %s680_s1, 256 }
  0x4a   : > { %p419_p4 = scmp.ne.s32.totalorder %s630_s12, %s418_s17  ;;  %p423_p12 = scmp.lt.u32.totalorder %s630_s12, %s680_s1 }
  0x4b   : > { %p424_p1 = scmp.lt.u32.totalorder %s422_s24, %s418_s17  ;;  %p426_p8 = scmp.lt.u32.totalorder %s418_s17, %s630_s12 }
  0x4c   : > { %p420_p7 = pnand %p419_p4, %p688_p9 }
  0x4d   : > { %p425_p3 = por %p424_p1, %p423_p12 }
  0x4e   : > { %p421_p10 = pneg %p420_p7 }
  0x4f   : > { %p427_p11 = por %p426_p8, %p425_p3 }
  0x51   : > { %p428_p0 = pnand %p427_p11, %p421_p10 }
  0x53   : > { %431 = shalt.err (!%p428_p0)
}
  0x54   : > { %s492_s3 = smov 32   ;;  %s493_s4 = smov 2  }
  0x55   : > { %310 = dma.vmem_to_hbm [thread:$0]  (%p688_p9), %s625_s29, 128, %s630_s12, %s178_s18, %s492_s3, %s492_s3, %s493_s4  }
  0x56 PF: > { %s210_s27 = sand.u32 1, %s466_s6   ;;  %p689_p6 = scmp.ne.s32.totalorder %s685_s21, 0 }
  0x57   : > { %p690_p13 = scmp.ge.s32.totalorder %s486_s11, 2  ;;  %s211_s30 = scalar_lea.sflag [#allocation4], %s210_s27 }
  0x59   : > { %p317_p2 = pnand %p690_p13, %p689_p6 }
  0x5b   : > { %461 = dma.done.wait (!%p317_p2), %s211_s30, 128  }
  0x5c   : > { %463 = vsyncadd (!%p317_p2), %s211_s30, 4294967168  ;;  %s17_s11 = sadd.s32 1, %s486_s11   ;;  %s691_s6 = smov %s470_s7 }
  0x5d   : > { %p14_p5 = scmp.ge.s32.totalorder %s17_s11, 4   ;;  %s692_s7 = smov %s474_s8 }
  0x5e   : > { %s693_s8 = smov %s560_s20  ;;  %s694_s9 = smov %s482_s10 }
  0x5f   : > { %s695_s10 = smov %s697_s14  ;;  %16 = sbr.rel (!%p14_p5) target bundleno = 6 (0x6), region = 71 }
  0x66   :  { %216 = vsyncpa [#allocation3], 1 }
  0x67   :  { %218 = vsyncpa [#allocation3 + $0x1], 1 }
  0x68   :  { %219 = vsyncpa [#allocation4], 1 }
  0x69   :  { %221 = vsyncpa [#allocation4 + $0x1], 1 }

</bundles_post_ra>
